<compile_context>
chip_gen: v7x
topology: tpu7x:2x2x1
jax: 0.10.0
libtpu: 0.0.40
codegen_flags: <defaults>
</compile_context>

<pallas_src>
import math

import jax
import jax.numpy as jnp
from jax.experimental import pallas as pl
from jax.experimental.pallas import tpu as pltpu


# -----------------------------------------------------------------------------
# Kernel: fused GCN layer1 + ReLU + GCN layer2 + FC for one batch element.
# -----------------------------------------------------------------------------
def gcn_fused_kernel(x_ref, adj_ref, w1_ref, b1_ref, w2_ref, b2_ref,
                     wfc_ref, bfc_ref, o_ref, hflat_ref):
    """One batch element, node-major layout.

    x_ref   : (N, S*F_in)          VMEM   (node-major input slice)
    adj_ref : (N, N)               VMEM
    w1_ref  : (S*F_in, S*H)        VMEM   kron(I_S, W1)
    b1_ref  : (1, S*H)             VMEM   tiled bias
    w2_ref  : (S*H, S*F_out)       VMEM   kron(I_S, W2)
    b2_ref  : (1, S*F_out)         VMEM   tiled bias
    wfc_ref : (N*S*F_out, OUT)     VMEM   FC weight, rows permuted to (n,s,f)
    bfc_ref : (1, OUT)             VMEM
    o_ref   : (1, OUT)             VMEM   output row for this batch element
    hflat_ref: (1, N*S*F_out)      VMEM scratch (lane-dense flatten buffer)
    """
    adj = adj_ref[...]

    # ---- layer 1: support = x @ W1 (block-diag) ; h = adj @ support + b1 ; relu
    s1 = jnp.dot(x_ref[...], w1_ref[...], preferred_element_type=jnp.float32)   # (N, S*H)
    h1 = jnp.dot(adj, s1, preferred_element_type=jnp.float32) + b1_ref[...]     # (N, S*H)
    h1 = jnp.maximum(h1, 0.0)
    # NOTE: F.dropout(training=False) is the identity at inference time.

    # ---- layer 2: support = h @ W2 (block-diag) ; h2 = adj @ support + b2
    s2 = jnp.dot(h1, w2_ref[...], preferred_element_type=jnp.float32)           # (N, S*F_out)
    h2 = jnp.dot(adj, s2, preferred_element_type=jnp.float32) + b2_ref[...]     # (N, S*F_out)

    # ---- fused FC: flatten (N, S*F_out) -> (1, N*S*F_out) via VMEM scratch
    # (explicit lane-dense relayout; row n goes to lanes [n*W, (n+1)*W)).
    n_rows, w = h2.shape
    for n in range(n_rows):                       # static unroll (N = 16 row stores)
        hflat_ref[:, n * w:(n + 1) * w] = h2[n:n + 1, :]

    y = (jnp.dot(hflat_ref[...], wfc_ref[...], preferred_element_type=jnp.float32)
         + bfc_ref[...])                                                        # (1, OUT)
    o_ref[...] = y.astype(o_ref.dtype)


# -----------------------------------------------------------------------------
# Wrapper
# -----------------------------------------------------------------------------
def gcn_forward(x, params, *, num_in_features, num_links, horizon, num_target_features):
    """Full GCN.forward. x: (B, seq_len, num_links * num_in_features)."""
    B, S = x.shape[0], x.shape[1]
    N = num_links
    F_in = num_in_features

    w1, b1 = params["w1"], params["b1"]          # (F_in, H), (1, H)
    w2, b2 = params["w2"], params["b2"]          # (H, F_out), (1, F_out)
    w_fc, b_fc = params["w_fc"], params["b_fc"]  # (S*N*F_out, OUT), (1, OUT)
    adj = params["adj"]                          # (N, N)

    H = w1.shape[1]
    F_out = w2.shape[1]
    out_size = w_fc.shape[1]

    # ---- layout plumbing (wrapper-side XLA, tiny) ----
    # x: (B, S, N*F_in) -> node-major (B, N, S*F_in)
    xk = x.reshape(B, S, N, F_in).transpose(0, 2, 1, 3).reshape(B, N, S * F_in)
    # Block-diagonal (per-timestep) weights so the kernel needs no transposes.
    eye_s = jnp.eye(S, dtype=w1.dtype)
    w1_big = jnp.kron(eye_s, w1)                 # (S*F_in, S*H)
    w2_big = jnp.kron(eye_s, w2)                 # (S*H, S*F_out)
    b1_t = jnp.tile(b1, (1, S))                  # (1, S*H)
    b2_t = jnp.tile(b2, (1, S))                  # (1, S*F_out)
    # FC weight rows reordered from (s, n, f) (PyTorch flatten order) to the
    # kernel's node-major flatten order (n, s, f).
    w_fc_p = (w_fc.reshape(S, N, F_out, out_size)
              .transpose(1, 0, 2, 3)
              .reshape(N * S * F_out, out_size))

    y = pl.pallas_call(
        gcn_fused_kernel,
        out_shape=jax.ShapeDtypeStruct((B, 1, out_size), jnp.float32),
        grid=(B,),
        in_specs=[
            # per-batch node-major input slice
            pl.BlockSpec((None, N, S * F_in), lambda b: (b, 0, 0)),
            # constants: full arrays, same block every step (stay VMEM-resident)
            pl.BlockSpec((N, N), lambda b: (0, 0)),
            pl.BlockSpec((S * F_in, S * H), lambda b: (0, 0)),
            pl.BlockSpec((1, S * H), lambda b: (0, 0)),
            pl.BlockSpec((S * H, S * F_out), lambda b: (0, 0)),
            pl.BlockSpec((1, S * F_out), lambda b: (0, 0)),
            pl.BlockSpec((N * S * F_out, out_size), lambda b: (0, 0)),
            pl.BlockSpec((1, out_size), lambda b: (0, 0)),
        ],
        out_specs=pl.BlockSpec((None, 1, out_size), lambda b: (b, 0, 0)),
        scratch_shapes=[pltpu.VMEM((1, N * S * F_out), jnp.float32)],
        compiler_params=pltpu.CompilerParams(
            # 2-step grid: keep it on a single core (don't shard µs-scale work
            # across v7x TensorCores).
            dimension_semantics=("arbitrary",),
        ),
    )(xk, adj, w1_big, b1_t, w2_big, b2_t, w_fc_p, b_fc)

    # y: (B, 1, OUT) -> (B, horizon, N, T) -> squeeze(-1)
    y = y.reshape(B, horizon, N, num_target_features)
    if num_target_features == 1:
        y = jnp.squeeze(y, axis=-1)
    return y


# -----------------------------------------------------------------------------
# Deterministic parameter init (mirrors the PyTorch module's init schemes)
# -----------------------------------------------------------------------------
def init_params(key, *, num_in_features, num_hidden, num_out_features,
                num_links, seq_len, horizon, num_target_features):
    ks = jax.random.split(key, 8)

    # GraphConvolutionLayer init: uniform(-1/sqrt(out_features), 1/sqrt(out_features))
    std1 = 1.0 / math.sqrt(num_hidden)
    w1 = jax.random.uniform(ks[0], (num_in_features, num_hidden), jnp.float32, -std1, std1)
    b1 = jax.random.uniform(ks[1], (1, num_hidden), jnp.float32, -std1, std1)

    std2 = 1.0 / math.sqrt(num_out_features)
    w2 = jax.random.uniform(ks[2], (num_hidden, num_out_features), jnp.float32, -std2, std2)
    b2 = jax.random.uniform(ks[3], (1, num_out_features), jnp.float32, -std2, std2)

    # nn.Linear default init: uniform(-1/sqrt(fan_in), 1/sqrt(fan_in)); stored as (in, out).
    input_size = seq_len * num_links * num_out_features
    output_size = num_links * num_target_features * horizon
    std_fc = 1.0 / math.sqrt(input_size)
    w_fc = jax.random.uniform(ks[4], (input_size, output_size), jnp.float32, -std_fc, std_fc)
    b_fc = jax.random.uniform(ks[5], (1, output_size), jnp.float32, -std_fc, std_fc)

    # Synthetic adjacency matrix (predictor.build_adj_matrix()): row-normalized
    # (self-loop + random neighbors) so it behaves like a k-hop adjacency.
    # TODO(synk): the real adjacency comes from the predictor's road graph.
    a = jax.random.uniform(ks[6], (num_links, num_links), jnp.float32)
    a = (a > 0.7).astype(jnp.float32) + jnp.eye(num_links, dtype=jnp.float32)
    adj = a / jnp.sum(a, axis=1, keepdims=True)

    return {"w1": w1, "b1": b1, "w2": w2, "b2": b2,
            "w_fc": w_fc, "b_fc": b_fc, "adj": adj}


# -----------------------------------------------------------------------------
# Main
# -----------------------------------------------------------------------------
if __name__ == "__main__":
    # Small, module-consistent shapes.
    B = 2                      # batch
    seq_len = 8                # predictor.seq_len
    num_links = 16             # N (graph nodes / road links)
    num_in_features = 4        # len(predictor.source_feature)
    num_hidden = 32
    num_out_features = 8       # gcn_outdim
    num_target_features = 1    # len(predictor.target_feature)
    horizon = 3                # predictor.horizon (int)
    dropout_prob = 0.5         # inference -> identity

    key = jax.random.PRNGKey(0)
    pkey, xkey = jax.random.split(key)

    params = init_params(
        pkey,
        num_in_features=num_in_features,
        num_hidden=num_hidden,
        num_out_features=num_out_features,
        num_links=num_links,
        seq_len=seq_len,
        horizon=horizon,
        num_target_features=num_target_features,
    )

    # Module input: (B, seq_len, num_links * num_in_features)
    x = jax.random.normal(xkey, (B, seq_len, num_links * num_in_features), jnp.float32)

    fwd = jax.jit(
        lambda xx: gcn_forward(
            xx, params,
            num_in_features=num_in_features,
            num_links=num_links,
            horizon=horizon,
            num_target_features=num_target_features,
        )
    )
    out = fwd(x)
    jax.block_until_ready(out)

    assert out.shape == (B, horizon, num_links), out.shape
    assert out.dtype == jnp.float32

    # Reference check in plain JAX (same math as the PyTorch module).
    xr = x.reshape(B, seq_len, num_links, num_in_features)
    h_ref = jnp.maximum(
        jnp.einsum("nm,bsmh->bsnh", params["adj"], xr @ params["w1"]) + params["b1"][0], 0.0)
    h_ref = jnp.einsum("nm,bsmh->bsnh", params["adj"], h_ref @ params["w2"]) + params["b2"][0]
    y_ref = h_ref.reshape(B, -1) @ params["w_fc"] + params["b_fc"][0]
    y_ref = y_ref.reshape(B, horizon, num_links)
    assert jnp.allclose(out, y_ref, atol=1e-4, rtol=1e-4), (
        float(jnp.max(jnp.abs(out - y_ref))))

    print("KERNEL_OK")
</pallas_src>

<mosaic_0001>
module attributes {stable_mosaic.version = 11 : i64} {
  func.func @gcn_fused_kernel(%arg0: i32, %arg1: memref<1x16x32xf32, #tpu.memory_space<vmem>>, %arg2: memref<16x16xf32, #tpu.memory_space<vmem>>, %arg3: memref<32x256xf32, #tpu.memory_space<vmem>>, %arg4: memref<1x256xf32, #tpu.memory_space<vmem>>, %arg5: memref<256x64xf32, #tpu.memory_space<vmem>>, %arg6: memref<1x64xf32, #tpu.memory_space<vmem>>, %arg7: memref<1024x48xf32, #tpu.memory_space<vmem>>, %arg8: memref<1x48xf32, #tpu.memory_space<vmem>>, %arg9: memref<1x1x48xf32, #tpu.memory_space<vmem>>, %arg10: memref<1x1024xf32, #tpu.memory_space<vmem>>) attributes {dimension_semantics = [#tpu.dimension_semantics<arbitrary>], iteration_bounds = array<i64: 2>, scalar_prefetch = 0 : i64, scratch_operands = 1 : i64, tpu.core_type = #tpu.core_type<tc>, window_params = [{transform_indices = @transform_0, window_bounds = array<i64: 1, 16, 32>}, {pipeline_mode = #tpu.pipeline_mode<synchronous>, transform_indices = @transform_1, window_bounds = array<i64: 16, 16>}, {pipeline_mode = #tpu.pipeline_mode<synchronous>, transform_indices = @transform_2, window_bounds = array<i64: 32, 256>}, {pipeline_mode = #tpu.pipeline_mode<synchronous>, transform_indices = @transform_3, window_bounds = array<i64: 1, 256>}, {pipeline_mode = #tpu.pipeline_mode<synchronous>, transform_indices = @transform_4, window_bounds = array<i64: 256, 64>}, {pipeline_mode = #tpu.pipeline_mode<synchronous>, transform_indices = @transform_5, window_bounds = array<i64: 1, 64>}, {pipeline_mode = #tpu.pipeline_mode<synchronous>, transform_indices = @transform_6, window_bounds = array<i64: 1024, 48>}, {pipeline_mode = #tpu.pipeline_mode<synchronous>, transform_indices = @transform_7, window_bounds = array<i64: 1, 48>}, {transform_indices = @transform_8, window_bounds = array<i64: 1, 1, 48>}]} {
    %c0 = arith.constant 0 : index
    %c0_0 = arith.constant 0 : index
    %0 = vector.load %arg2[%c0, %c0_0] : memref<16x16xf32, #tpu.memory_space<vmem>>, vector<16x16xf32>
    %c0_1 = arith.constant 0 : index
    %c0_2 = arith.constant 0 : index
    %c0_3 = arith.constant 0 : index
    %1 = vector.load %arg1[%c0_1, %c0_2, %c0_3] : memref<1x16x32xf32, #tpu.memory_space<vmem>>, vector<1x16x32xf32>
    %2 = vector.shape_cast %1 : vector<1x16x32xf32> to vector<16x32xf32>
    %c0_4 = arith.constant 0 : index
    %c0_5 = arith.constant 0 : index
    %3 = vector.load %arg3[%c0_4, %c0_5] : memref<32x256xf32, #tpu.memory_space<vmem>>, vector<32x256xf32>
    %cst = arith.constant dense<0.000000e+00> : vector<16x256xf32>
    %4 = tpu.matmul %2, %3, %cst {dimension_numbers = #tpu.dot_dimension_numbers<[1], [0], [0], [1], [0, 0, 1, 1], [], []>} : vector<16x32xf32>, vector<32x256xf32>, vector<16x256xf32> -> vector<16x256xf32>
    %cst_6 = arith.constant dense<0.000000e+00> : vector<16x256xf32>
    %5 = tpu.matmul %0, %4, %cst_6 {dimension_numbers = #tpu.dot_dimension_numbers<[1], [0], [0], [1], [0, 0, 1, 1], [], []>} : vector<16x16xf32>, vector<16x256xf32>, vector<16x256xf32> -> vector<16x256xf32>
    %c0_7 = arith.constant 0 : index
    %c0_8 = arith.constant 0 : index
    %6 = vector.load %arg4[%c0_7, %c0_8] : memref<1x256xf32, #tpu.memory_space<vmem>>, vector<1x256xf32>
    %7 = vector.broadcast %6 : vector<1x256xf32> to vector<16x256xf32>
    %8 = arith.addf %5, %7 : vector<16x256xf32>
    %cst_9 = arith.constant 0.000000e+00 : f32
    %9 = vector.broadcast %cst_9 : f32 to vector<16x256xf32>
    %10 = arith.maximumf %8, %9 : vector<16x256xf32>
    %c0_10 = arith.constant 0 : index
    %c0_11 = arith.constant 0 : index
    %11 = vector.load %arg5[%c0_10, %c0_11] : memref<256x64xf32, #tpu.memory_space<vmem>>, vector<256x64xf32>
    %cst_12 = arith.constant dense<0.000000e+00> : vector<16x64xf32>
    %12 = tpu.matmul %10, %11, %cst_12 {dimension_numbers = #tpu.dot_dimension_numbers<[1], [0], [0], [1], [0, 0, 1, 1], [], []>} : vector<16x256xf32>, vector<256x64xf32>, vector<16x64xf32> -> vector<16x64xf32>
    %cst_13 = arith.constant dense<0.000000e+00> : vector<16x64xf32>
    %13 = tpu.matmul %0, %12, %cst_13 {dimension_numbers = #tpu.dot_dimension_numbers<[1], [0], [0], [1], [0, 0, 1, 1], [], []>} : vector<16x16xf32>, vector<16x64xf32>, vector<16x64xf32> -> vector<16x64xf32>
    %c0_14 = arith.constant 0 : index
    %c0_15 = arith.constant 0 : index
    %14 = vector.load %arg6[%c0_14, %c0_15] : memref<1x64xf32, #tpu.memory_space<vmem>>, vector<1x64xf32>
    %15 = vector.broadcast %14 : vector<1x64xf32> to vector<16x64xf32>
    %16 = arith.addf %13, %15 : vector<16x64xf32>
    %17 = vector.extract_strided_slice %16 {offsets = [0, 0], sizes = [1, 64], strides = [1, 1]} : vector<16x64xf32> to vector<1x64xf32>
    %c0_16 = arith.constant 0 : index
    %c0_17 = arith.constant 0 : index
    %18 = vector.load %arg10[%c0_16, %c0_17] : memref<1x1024xf32, #tpu.memory_space<vmem>>, vector<1x64xf32>
    tpu.vector_store %arg10[%c0_16, %c0_17], %17 {strides = array<i32>} : memref<1x1024xf32, #tpu.memory_space<vmem>>, vector<1x64xf32>,
    %19 = vector.extract_strided_slice %16 {offsets = [1, 0], sizes = [1, 64], strides = [1, 1]} : vector<16x64xf32> to vector<1x64xf32>
    %c0_18 = arith.constant 0 : index
    %c64 = arith.constant 64 : index
    %20 = vector.load %arg10[%c0_18, %c64] : memref<1x1024xf32, #tpu.memory_space<vmem>>, vector<1x64xf32>
    tpu.vector_store %arg10[%c0_18, %c64], %19 {strides = array<i32>} : memref<1x1024xf32, #tpu.memory_space<vmem>>, vector<1x64xf32>,
    %21 = vector.extract_strided_slice %16 {offsets = [2, 0], sizes = [1, 64], strides = [1, 1]} : vector<16x64xf32> to vector<1x64xf32>
    %c0_19 = arith.constant 0 : index
    %c128 = arith.constant 128 : index
    %22 = vector.load %arg10[%c0_19, %c128] : memref<1x1024xf32, #tpu.memory_space<vmem>>, vector<1x64xf32>
    tpu.vector_store %arg10[%c0_19, %c128], %21 {strides = array<i32>} : memref<1x1024xf32, #tpu.memory_space<vmem>>, vector<1x64xf32>,
    %23 = vector.extract_strided_slice %16 {offsets = [3, 0], sizes = [1, 64], strides = [1, 1]} : vector<16x64xf32> to vector<1x64xf32>
    %c0_20 = arith.constant 0 : index
    %c192 = arith.constant 192 : index
    %24 = vector.load %arg10[%c0_20, %c192] : memref<1x1024xf32, #tpu.memory_space<vmem>>, vector<1x64xf32>
    tpu.vector_store %arg10[%c0_20, %c192], %23 {strides = array<i32>} : memref<1x1024xf32, #tpu.memory_space<vmem>>, vector<1x64xf32>,
    %25 = vector.extract_strided_slice %16 {offsets = [4, 0], sizes = [1, 64], strides = [1, 1]} : vector<16x64xf32> to vector<1x64xf32>
    %c0_21 = arith.constant 0 : index
    %c256 = arith.constant 256 : index
    %26 = vector.load %arg10[%c0_21, %c256] : memref<1x1024xf32, #tpu.memory_space<vmem>>, vector<1x64xf32>
    tpu.vector_store %arg10[%c0_21, %c256], %25 {strides = array<i32>} : memref<1x1024xf32, #tpu.memory_space<vmem>>, vector<1x64xf32>,
    %27 = vector.extract_strided_slice %16 {offsets = [5, 0], sizes = [1, 64], strides = [1, 1]} : vector<16x64xf32> to vector<1x64xf32>
    %c0_22 = arith.constant 0 : index
    %c320 = arith.constant 320 : index
    %28 = vector.load %arg10[%c0_22, %c320] : memref<1x1024xf32, #tpu.memory_space<vmem>>, vector<1x64xf32>
    tpu.vector_store %arg10[%c0_22, %c320], %27 {strides = array<i32>} : memref<1x1024xf32, #tpu.memory_space<vmem>>, vector<1x64xf32>,
    %29 = vector.extract_strided_slice %16 {offsets = [6, 0], sizes = [1, 64], strides = [1, 1]} : vector<16x64xf32> to vector<1x64xf32>
    %c0_23 = arith.constant 0 : index
    %c384 = arith.constant 384 : index
    %30 = vector.load %arg10[%c0_23, %c384] : memref<1x1024xf32, #tpu.memory_space<vmem>>, vector<1x64xf32>
    tpu.vector_store %arg10[%c0_23, %c384], %29 {strides = array<i32>} : memref<1x1024xf32, #tpu.memory_space<vmem>>, vector<1x64xf32>,
    %31 = vector.extract_strided_slice %16 {offsets = [7, 0], sizes = [1, 64], strides = [1, 1]} : vector<16x64xf32> to vector<1x64xf32>
    %c0_24 = arith.constant 0 : index
    %c448 = arith.constant 448 : index
    %32 = vector.load %arg10[%c0_24, %c448] : memref<1x1024xf32, #tpu.memory_space<vmem>>, vector<1x64xf32>
    tpu.vector_store %arg10[%c0_24, %c448], %31 {strides = array<i32>} : memref<1x1024xf32, #tpu.memory_space<vmem>>, vector<1x64xf32>,
    %33 = vector.extract_strided_slice %16 {offsets = [8, 0], sizes = [1, 64], strides = [1, 1]} : vector<16x64xf32> to vector<1x64xf32>
    %c0_25 = arith.constant 0 : index
    %c512 = arith.constant 512 : index
    %34 = vector.load %arg10[%c0_25, %c512] : memref<1x1024xf32, #tpu.memory_space<vmem>>, vector<1x64xf32>
    tpu.vector_store %arg10[%c0_25, %c512], %33 {strides = array<i32>} : memref<1x1024xf32, #tpu.memory_space<vmem>>, vector<1x64xf32>,
    %35 = vector.extract_strided_slice %16 {offsets = [9, 0], sizes = [1, 64], strides = [1, 1]} : vector<16x64xf32> to vector<1x64xf32>
    %c0_26 = arith.constant 0 : index
    %c576 = arith.constant 576 : index
    %36 = vector.load %arg10[%c0_26, %c576] : memref<1x1024xf32, #tpu.memory_space<vmem>>, vector<1x64xf32>
    tpu.vector_store %arg10[%c0_26, %c576], %35 {strides = array<i32>} : memref<1x1024xf32, #tpu.memory_space<vmem>>, vector<1x64xf32>,
    %37 = vector.extract_strided_slice %16 {offsets = [10, 0], sizes = [1, 64], strides = [1, 1]} : vector<16x64xf32> to vector<1x64xf32>
    %c0_27 = arith.constant 0 : index
    %c640 = arith.constant 640 : index
    %38 = vector.load %arg10[%c0_27, %c640] : memref<1x1024xf32, #tpu.memory_space<vmem>>, vector<1x64xf32>
    tpu.vector_store %arg10[%c0_27, %c640], %37 {strides = array<i32>} : memref<1x1024xf32, #tpu.memory_space<vmem>>, vector<1x64xf32>,
    %39 = vector.extract_strided_slice %16 {offsets = [11, 0], sizes = [1, 64], strides = [1, 1]} : vector<16x64xf32> to vector<1x64xf32>
    %c0_28 = arith.constant 0 : index
    %c704 = arith.constant 704 : index
    %40 = vector.load %arg10[%c0_28, %c704] : memref<1x1024xf32, #tpu.memory_space<vmem>>, vector<1x64xf32>
    tpu.vector_store %arg10[%c0_28, %c704], %39 {strides = array<i32>} : memref<1x1024xf32, #tpu.memory_space<vmem>>, vector<1x64xf32>,
    %41 = vector.extract_strided_slice %16 {offsets = [12, 0], sizes = [1, 64], strides = [1, 1]} : vector<16x64xf32> to vector<1x64xf32>
    %c0_29 = arith.constant 0 : index
    %c768 = arith.constant 768 : index
    %42 = vector.load %arg10[%c0_29, %c768] : memref<1x1024xf32, #tpu.memory_space<vmem>>, vector<1x64xf32>
    tpu.vector_store %arg10[%c0_29, %c768], %41 {strides = array<i32>} : memref<1x1024xf32, #tpu.memory_space<vmem>>, vector<1x64xf32>,
    %43 = vector.extract_strided_slice %16 {offsets = [13, 0], sizes = [1, 64], strides = [1, 1]} : vector<16x64xf32> to vector<1x64xf32>
    %c0_30 = arith.constant 0 : index
    %c832 = arith.constant 832 : index
    %44 = vector.load %arg10[%c0_30, %c832] : memref<1x1024xf32, #tpu.memory_space<vmem>>, vector<1x64xf32>
    tpu.vector_store %arg10[%c0_30, %c832], %43 {strides = array<i32>} : memref<1x1024xf32, #tpu.memory_space<vmem>>, vector<1x64xf32>,
    %45 = vector.extract_strided_slice %16 {offsets = [14, 0], sizes = [1, 64], strides = [1, 1]} : vector<16x64xf32> to vector<1x64xf32>
    %c0_31 = arith.constant 0 : index
    %c896 = arith.constant 896 : index
    %46 = vector.load %arg10[%c0_31, %c896] : memref<1x1024xf32, #tpu.memory_space<vmem>>, vector<1x64xf32>
    tpu.vector_store %arg10[%c0_31, %c896], %45 {strides = array<i32>} : memref<1x1024xf32, #tpu.memory_space<vmem>>, vector<1x64xf32>,
    %47 = vector.extract_strided_slice %16 {offsets = [15, 0], sizes = [1, 64], strides = [1, 1]} : vector<16x64xf32> to vector<1x64xf32>
    %c0_32 = arith.constant 0 : index
    %c960 = arith.constant 960 : index
    %48 = vector.load %arg10[%c0_32, %c960] : memref<1x1024xf32, #tpu.memory_space<vmem>>, vector<1x64xf32>
    tpu.vector_store %arg10[%c0_32, %c960], %47 {strides = array<i32>} : memref<1x1024xf32, #tpu.memory_space<vmem>>, vector<1x64xf32>,
    %c0_33 = arith.constant 0 : index
    %c0_34 = arith.constant 0 : index
    %49 = vector.load %arg10[%c0_33, %c0_34] : memref<1x1024xf32, #tpu.memory_space<vmem>>, vector<1x1024xf32>
    %c0_35 = arith.constant 0 : index
    %c0_36 = arith.constant 0 : index
    %50 = vector.load %arg7[%c0_35, %c0_36] : memref<1024x48xf32, #tpu.memory_space<vmem>>, vector<1024x48xf32>
    %cst_37 = arith.constant dense<0.000000e+00> : vector<1x48xf32>
    %51 = tpu.matmul %49, %50, %cst_37 {dimension_numbers = #tpu.dot_dimension_numbers<[1], [0], [0], [1], [0, 0, 1, 1], [], []>} : vector<1x1024xf32>, vector<1024x48xf32>, vector<1x48xf32> -> vector<1x48xf32>
    %c0_38 = arith.constant 0 : index
    %c0_39 = arith.constant 0 : index
    %52 = vector.load %arg8[%c0_38, %c0_39] : memref<1x48xf32, #tpu.memory_space<vmem>>, vector<1x48xf32>
    %53 = arith.addf %51, %52 : vector<1x48xf32>
    %c0_40 = arith.constant 0 : index
    %c0_41 = arith.constant 0 : index
    %c0_42 = arith.constant 0 : index
    %54 = vector.load %arg9[%c0_40, %c0_41, %c0_42] : memref<1x1x48xf32, #tpu.memory_space<vmem>>, vector<1x1x48xf32>
    %55 = vector.shape_cast %54 : vector<1x1x48xf32> to vector<1x48xf32>
    %56 = vector.shape_cast %53 : vector<1x48xf32> to vector<1x1x48xf32>
    tpu.vector_store %arg9[%c0_40, %c0_41, %c0_42], %56 {strides = array<i32>} : memref<1x1x48xf32, #tpu.memory_space<vmem>>, vector<1x1x48xf32>,
    return
  }
  func.func @transform_0(%arg0: i32) -> (i32, i32, i32) {
    %c0_i32 = arith.constant 0 : i32
    %c0_i32_0 = arith.constant 0 : i32
    %c0_i32_1 = arith.constant 0 : i32
    return %arg0, %c0_i32, %c0_i32_0 : i32, i32, i32
  }
  func.func @transform_1(%arg0: i32) -> (i32, i32) {
    %c0_i32 = arith.constant 0 : i32
    %c0_i32_0 = arith.constant 0 : i32
    %c0_i32_1 = arith.constant 0 : i32
    return %c0_i32, %c0_i32_0 : i32, i32
  }
  func.func @transform_2(%arg0: i32) -> (i32, i32) {
    %c0_i32 = arith.constant 0 : i32
    %c0_i32_0 = arith.constant 0 : i32
    %c0_i32_1 = arith.constant 0 : i32
    return %c0_i32, %c0_i32_0 : i32, i32
  }
  func.func @transform_3(%arg0: i32) -> (i32, i32) {
    %c0_i32 = arith.constant 0 : i32
    %c0_i32_0 = arith.constant 0 : i32
    %c0_i32_1 = arith.constant 0 : i32
    return %c0_i32, %c0_i32_0 : i32, i32
  }
  func.func @transform_4(%arg0: i32) -> (i32, i32) {
    %c0_i32 = arith.constant 0 : i32
    %c0_i32_0 = arith.constant 0 : i32
    %c0_i32_1 = arith.constant 0 : i32
    return %c0_i32, %c0_i32_0 : i32, i32
  }
  func.func @transform_5(%arg0: i32) -> (i32, i32) {
    %c0_i32 = arith.constant 0 : i32
    %c0_i32_0 = arith.constant 0 : i32
    %c0_i32_1 = arith.constant 0 : i32
    return %c0_i32, %c0_i32_0 : i32, i32
  }
  func.func @transform_6(%arg0: i32) -> (i32, i32) {
    %c0_i32 = arith.constant 0 : i32
    %c0_i32_0 = arith.constant 0 : i32
    %c0_i32_1 = arith.constant 0 : i32
    return %c0_i32, %c0_i32_0 : i32, i32
  }
  func.func @transform_7(%arg0: i32) -> (i32, i32) {
    %c0_i32 = arith.constant 0 : i32
    %c0_i32_0 = arith.constant 0 : i32
    %c0_i32_1 = arith.constant 0 : i32
    return %c0_i32, %c0_i32_0 : i32, i32
  }
  func.func @transform_8(%arg0: i32) -> (i32, i32, i32) {
    %c0_i32 = arith.constant 0 : i32
    %c0_i32_0 = arith.constant 0 : i32
    %c0_i32_1 = arith.constant 0 : i32
    return %arg0, %c0_i32, %c0_i32_0 : i32, i32, i32
  }
}

</mosaic_0001>

<bundles_post_ra>
// kernel: _lambda_.1
= control target key start
LH: loop header
LB: loop body
LE: loop exit
PB: predicated region body
PF: predicated region fallthrough
CT: control target
= control target key end

     0   :  { %s1789_s27 = smov 0   ;;  %s2437_s0 = inlined_call_operand.vmem [shape: f32[2,16,32], index: 0, kind: input, shape index: {}]   ;;  %s2438_s1 = inlined_call_operand.vmem [shape: f32[16,16], index: 1, kind: input, shape index: {}]   ;;  %s2439_s2 = inlined_call_operand.vmem [shape: f32[32,256], index: 2, kind: input, shape index: {}]   ;;  %s2440_s3 = inlined_call_operand.vmem [shape: f32[1,256], index: 3, kind: input, shape index: {}]   ;;  %s2441_s4 = inlined_call_operand.vmem [shape: f32[256,64], index: 4, kind: input, shape index: {}]   ;;  %s2442_s5 = inlined_call_operand.vmem [shape: f32[1,64], index: 5, kind: input, shape index: {}]   ;;  %s2443_s6 = inlined_call_operand.vmem [shape: f32[1024,48], index: 6, kind: input, shape index: {}]   ;;  %s2444_s7 = inlined_call_operand.vmem [shape: f32[1,48], index: 7, kind: input, shape index: {}]   ;;  %s2445_s8 = inlined_call_operand.vmem [shape: f32[2,1,48], index: 8, kind: output, shape index: {}]  }
   0x1 LB: > { %s1340_s28 = sadd.s32 4294967295, %s1739_s27   ;;  %p1344_p0 = scmp.ge.s32.totalorder %s1739_s27, 1  ;;  %s1739_s27 = sphi %s1789_s27, %s18_s27  }
   0x2   : > { %p262_p1 = scmp.lt.s32.totalorder %s1739_s27, 3 }
   0x4   : > { %p263_p2 = pnand %p1344_p0, %p262_p1 }
   0x5   : > { %v307_v0 = vld [vmem:[%s2439_s2 + $0x8] sm:$0xff] (!%p263_p2)  ;;  %v309_v1 = vld [vmem:[%s2439_s2 + $0x18] sm:$0xff] (!%p263_p2)  ;;  %v306_v2 = vld [vmem:[%s2439_s2] sm:$0xff] (!%p263_p2)  ;;  %p294_p3 = scmp.lt.s32.totalorder (!%p263_p2), %s1340_s28, 1  ;;  %v1741_v7 = vmov (!%p263_p2), 0.0   ;;  %vm314_vm0 = vcmask (!%p263_p2), 261120  }
   0x6   : > { %266 = sbr.rel (%p263_p2) target bundleno = 1295 (0x50f), region = 52  ;;  %v1546_v3 = vpack.c.bf16 (!%p263_p2), %v309_v1, %v307_v0  ;;  %v308_v4 = vld [vmem:[%s2439_s2 + $0x10] sm:$0xff] (!%p263_p2)  ;;  %v311_v5 = vld [vmem:[%s2439_s2 + $0x28] sm:$0xff] (!%p263_p2)  ;;  %v313_v6 = vld [vmem:[%s2439_s2 + $0x38] sm:$0xff] (!%p263_p2)  ;;  %385 = vmatprep.mubr.f32.mxu0 (!%p263_p2), %v1741_v7  ;;  %vm410_vm1 = vcmask (!%p263_p2), 130048   ;;  %s1743_s15 = smov (!%p263_p2), 64  }
   0x7   : > { %v1548_v8 = vpack.c.bf16 (!%p263_p2), %v308_v4, %v306_v2  ;;  %v1550_v9 = vpack.c.bf16 (!%p263_p2), %v313_v6, %v311_v5  ;;  %v310_v10 = vld [vmem:[%s2439_s2 + $0x20] sm:$0xff] (!%p263_p2)  ;;  %v312_v11 = vld [vmem:[%s2439_s2 + $0x30] sm:$0xff] (!%p263_p2)  ;;  %v515_v16 = vld [vmem:[%s2441_s4 + $0x88] sm:$0xff] (!%p263_p2)  ;;  %vm1291_vm6 = vcmask (!%p263_p2), 385024  }
   0x8   : > { %1547 = vmatprep.subr.bf16.mxu0 (!%p263_p2), %v1546_v3  ;;  %v1552_v12 = vpack.c.bf16 (!%p263_p2), %v312_v11, %v310_v10  ;;  %v514_v15 = vld [vmem:[%s2441_s4 + $0x80] sm:$0xff] (!%p263_p2)  ;;  %v499_v19 = vld [vmem:[%s2441_s4 + $0x8] sm:$0xff] (!%p263_p2)  ;;  %v516_v20 = vld [vmem:[%s2441_s4 + $0x90] sm:$0xff] (!%p263_p2) }
   0x9   : > { %1549 = vmatpush1.bf16.msra.mxu0 (!%p263_p2), %v1548_v8  ;;  %v498_v17 = vld [vmem:[%s2441_s4] sm:$0xff] (!%p263_p2)  ;;  %v1558_v18 = vpack.c.bf16 (!%p263_p2), %v515_v16, %v514_v15  ;;  %v517_v21 = vld [vmem:[%s2441_s4 + $0x98] sm:$0xff] (!%p263_p2)  ;;  %v500_v24 = vld [vmem:[%s2441_s4 + $0x10] sm:$0xff] (!%p263_p2) }
   0xa   : > { %1551 = vmatprep.subr.bf16.mxu0 (!%p263_p2), %v1550_v9  ;;  %v1560_v22 = vpack.c.bf16 (!%p263_p2), %v499_v19, %v498_v17  ;;  %v1562_v23 = vpack.c.bf16 (!%p263_p2), %v517_v21, %v516_v20  ;;  %v501_v25 = vld [vmem:[%s2441_s4 + $0x18] sm:$0xff] (!%p263_p2)  ;;  %v518_v26 = vld [vmem:[%s2441_s4 + $0xa0] sm:$0xff] (!%p263_p2)  ;;  %v519_v27 = vld [vmem:[%s2441_s4 + $0xa8] sm:$0xff] (!%p263_p2) }
   0xb   : > { %1559 = vmatprep.subr.bf16.mxu1 (!%p263_p2), %v1558_v18  ;;  %v1564_v28 = vpack.c.bf16 (!%p263_p2), %v501_v25, %v500_v24  ;;  %v1566_v29 = vpack.c.bf16 (!%p263_p2), %v519_v27, %v518_v26  ;;  %v502_v30 = vld [vmem:[%s2441_s4 + $0x20] sm:$0xff] (!%p263_p2)  ;;  %v503_v31 = vld [vmem:[%s2441_s4 + $0x28] sm:$0xff] (!%p263_p2)  ;;  %v520_v32 = vld [vmem:[%s2441_s4 + $0xb0] sm:$0xff] (!%p263_p2) }
   0xc   : > { %1561 = vmatpush3.bf16.msra.mxu1 (!%p263_p2), %v1560_v22  ;;  %v521_v33 = vld [vmem:[%s2441_s4 + $0xb8] sm:$0xff] (!%p263_p2)  ;;  %v1568_v34 = vpack.c.bf16 (!%p263_p2), %v503_v31, %v502_v30  ;;  %v504_v36 = vld [vmem:[%s2441_s4 + $0x30] sm:$0xff] (!%p263_p2)  ;;  %v522_v38 = vld [vmem:[%s2441_s4 + $0xc0] sm:$0xff] (!%p263_p2) }
   0xd   : > { %s2451_s28 = smov (!%p294_p3, %s1340_s28), 1  ;;  %1553 = vmatpush1.bf16.msra.mxu0 %v1552_v12  ;;  %1563 = vmatprep.subr.bf16.mxu1 %v1562_v23  ;;  %v1570_v35 = vpack.c.bf16 %v521_v33, %v520_v32  ;;  %v505_v37 = vld [vmem:[%s2441_s4 + $0x38] sm:$0xff]  ;;  %v523_v39 = vld [vmem:[%s2441_s4 + $0xc8] sm:$0xff]  ;;  %v506_v42 = vld [vmem:[%s2441_s4 + $0x40] sm:$0xff] }
   0xe   : > { %s1356_s23 = sshll.u32 %s2451_s28, 4  ;;  %v1572_v40 = vpack.c.bf16 %v505_v37, %v504_v36  ;;  %v1574_v41 = vpack.c.bf16 %v523_v39, %v522_v38  ;;  %v507_v43 = vld [vmem:[%s2441_s4 + $0x48] sm:$0xff]  ;;  %v524_v44 = vld [vmem:[%s2441_s4 + $0xd0] sm:$0xff]  ;;  %v525_v45 = vld [vmem:[%s2441_s4 + $0xd8] sm:$0xff]  ;;  %s301_s21 = scalar_lea.vmem %s2445_s8, %s2451_s28 }
   0xf   : > { %s298_s26 = scalar_lea.vmem %s2437_s0, %s1356_s23  ;;  %v1576_v46 = vpack.c.bf16 %v507_v43, %v506_v42  ;;  %v1578_v47 = vpack.c.bf16 %v525_v45, %v524_v44  ;;  %v508_v48 = vld [vmem:[%s2441_s4 + $0x50] sm:$0xff]  ;;  %v509_v49 = vld [vmem:[%s2441_s4 + $0x58] sm:$0xff]  ;;  %v526_v50 = vld [vmem:[%s2441_s4 + $0xe0] sm:$0xff] }
  0x10   : > { %v304_v13 = vld [vmem:[%s298_s26] sm:$0xff]  ;;  %v305_v14 = vld [vmem:[%s298_s26 + $0x8] sm:$0xff]  ;;  %1565 = vmatpush3.bf16.msra.mxu1 %v1564_v28  ;;  %v1580_v52 = vpack.c.bf16 %v509_v49, %v508_v48  ;;  %v528_v1 = vld [vmem:[%s2441_s4 + $0xf0] sm:$0xff] }
  0x11   : > { %1347 = vmatmul.mubr.msk.f32.vlgmr.msra.gmra.mrb[0].mxu0 %vm314_vm0, %v304_v13  ;;  %1567 = vmatprep.subr.bf16.mxu1 %v1566_v29  ;;  %v527_v51 = vld [vmem:[%s2441_s4 + $0xe8] sm:$0xff]  ;;  %v302_v60 = vld [vmem:[%s2438_s1] sm:$0xff]  ;;  %v529_v2 = vld [vmem:[%s2441_s4 + $0xf8] sm:$0xff] }
  0x12   : > { %391 = vmatprep.mubr.f32.mxu0 %v1741_v7  ;;  %v1582_v53 = vpack.c.bf16 %v527_v51, %v526_v50  ;;  %v303_v61 = vld [vmem:[%s2438_s1 + $0x8] sm:$0xff]  ;;  %v510_v62 = vld [vmem:[%s2441_s4 + $0x60] sm:$0xff]  ;;  %v1586_v3 = vpack.c.bf16 %v529_v2, %v528_v1  ;;  %v512_v4 = vld [vmem:[%s2441_s4 + $0x70] sm:$0xff] }
  0x13   : > { %v511_v63 = vld [vmem:[%s2441_s4 + $0x68] sm:$0xff]  ;;  %v513_v5 = vld [vmem:[%s2441_s4 + $0x78] sm:$0xff]  ;;  %v398_v10 = vld [vmem:[%s2440_s3] sm:$0x3] }
  0x14   : > { %1569 = vmatpush3.bf16.msra.mxu1 %v1568_v34  ;;  %v1584_v0 = vpack.c.bf16 %v511_v63, %v510_v62  ;;  %v1588_v6 = vpack.c.bf16 %v513_v5, %v512_v4  ;;  %v857_v33 = vld [vmem:[%s2443_s6 + $0x80] sm:$0xff]  ;;  %v858_v34 = vld [vmem:[%s2443_s6 + $0x88] sm:$0xff]  ;;  %v859_v44 = vld [vmem:[%s2443_s6 + $0x90] sm:$0xff] }
  0x15   : > { %1348 = vmatmul.mubr.msk.f32.gmra.mrb[2].mxu0 %vm314_vm0, %v305_v14  ;;  %1571 = vmatprep.subr.bf16.mxu1 %v1570_v35  ;;  %v889_v35 = vld [vmem:[%s2443_s6 + $0x180] sm:$0xff]  ;;  %v1594_v36 = vpack.c.bf16 %v858_v34, %v857_v33  ;;  %v890_v37 = vld [vmem:[%s2443_s6 + $0x188] sm:$0xff]  ;;  %v892_v48 = vld [vmem:[%s2443_s6 + $0x198] sm:$0xff] }
  0x16   : > { %481 = vmatprep.mubr.f32.mxu0 %v1741_v7  ;;  %v841_v38 = vld [vmem:[%s2443_s6] sm:$0xff]  ;;  %v842_v39 = vld [vmem:[%s2443_s6 + $0x8] sm:$0xff]  ;;  %v843_v51 = vld [vmem:[%s2443_s6 + $0x10] sm:$0xff] }
  0x17   : > { %v873_v42 = vld [vmem:[%s2443_s6 + $0x100] sm:$0xff]  ;;  %v874_v43 = vld [vmem:[%s2443_s6 + $0x108] sm:$0xff] }
  0x18   : > { %1573 = vmatpush3.bf16.msra.mxu1 %v1572_v40  ;;  %v1626_v40 = vpack.c.bf16 %v890_v37, %v889_v35  ;;  %v1628_v45 = vpack.c.bf16 %v874_v43, %v873_v42  ;;  %v894_v63 = vld [vmem:[%s2443_s6 + $0x1a8] sm:$0xff]  ;;  %v877_v5 = vld [vmem:[%s2443_s6 + $0x120] sm:$0xff] }
  0x19   : > { %1575 = vmatprep.subr.bf16.mxu1 %v1574_v41  ;;  %v1596_v41 = vpack.c.bf16 %v842_v39, %v841_v38  ;;  %v846_v1 = vld [vmem:[%s2443_s6 + $0x28] sm:$0xff]  ;;  %v881_v42 = vld [vmem:[%s2443_s6 + $0x140] sm:$0xff] }
  0x1a   : > { %v898_v35 = vld [vmem:[%s2443_s6 + $0x1c8] sm:$0xff] }
  0x1b   : > { %v850_v37 = vld [vmem:[%s2443_s6 + $0x48] sm:$0xff] }
  0x1c   : > { %1577 = vmatpush3.bf16.msra.mxu1 %v1576_v46  ;;  %v860_v46 = vld [vmem:[%s2443_s6 + $0x98] sm:$0xff]  ;;  %v882_v43 = vld [vmem:[%s2443_s6 + $0x148] sm:$0xff] }
  0x1d   : > { %1579 = vmatprep.subr.bf16.mxu1 %v1578_v47  ;;  %v891_v47 = vld [vmem:[%s2443_s6 + $0x190] sm:$0xff]  ;;  %v1598_v49 = vpack.c.bf16 %v860_v46, %v859_v44  ;;  %v1644_v46 = vpack.c.bf16 %v882_v43, %v881_v42 }
  0x1e   : > { %v1630_v50 = vpack.c.bf16 %v892_v48, %v891_v47 }
  0x20   : > { %1581 = vmatpush3.bf16.msra.mxu1 %v1580_v52  ;;  %v844_v52 = vld [vmem:[%s2443_s6 + $0x18] sm:$0xff] }
  0x21   : > { %1583 = vmatprep.subr.bf16.mxu1 %v1582_v53  ;;  %v875_v53 = vld [vmem:[%s2443_s6 + $0x110] sm:$0xff] }
  0x24   : > { %1585 = vmatpush3.bf16.msra.mxu1 %v1584_v0  ;;  %v845_v0 = vld [vmem:[%s2443_s6 + $0x20] sm:$0xff] }
  0x25   : > { %1587 = vmatprep.subr.bf16.mxu1 %v1586_v3  ;;  %v1604_v4 = vpack.c.bf16 %v846_v1, %v845_v0  ;;  %v884_v0 = vld [vmem:[%s2443_s6 + $0x158] sm:$0xff] }
  0x28   : > { %1589 = vmatpush3.bf16.msra.mxu1 %v1588_v6  ;;  %v878_v6 = vld [vmem:[%s2443_s6 + $0x128] sm:$0xff] }
  0x29   : > { %1627 = vmatprep.subr.bf16.mxu1 %v1626_v40 }
  0xe4   : > { %v387_v54 = vpop.f32.mrb[0].mxu0 }
  0xe5   : > { %v389_v55 = vpop.f32.mrb[1].mxu0 }
  0xe8   : > { %v393_v56 = vpop.f32.mrb[2].mxu0 }
  0xe9   : > { %v1556_v57 = vpack.c.bf16 %v393_v56, %v387_v54  ;;  %v395_v58 = vpop.f32.mrb[3].mxu0  ;;  %v1600_v54 = vpack.c.bf16 %v844_v52, %v843_v51  ;;  %v868_v51 = vld [vmem:[%s2443_s6 + $0xd8] sm:$0xff]  ;;  %v899_v52 = vld [vmem:[%s2443_s6 + $0x1d0] sm:$0xff] }
  0xea   : > { %v1554_v59 = vpack.c.bf16 %v395_v58, %v389_v55  ;;  %v876_v55 = vld [vmem:[%s2443_s6 + $0x118] sm:$0xff] }
  0xeb   : > { %v1632_v56 = vpack.c.bf16 %v876_v55, %v875_v53 }
  0xec   : > { %1555 = vmatprep.subr.bf16.mxu0 %v1554_v59  ;;  %v861_v59 = vld [vmem:[%s2443_s6 + $0xa0] sm:$0xff] }
  0xed   : > { %1557 = vmatpush1.bf16.msra.mxu0 %v1556_v57  ;;  %v1742_v57 = vmov 1966171168  }
  0xee   : > { %v694_v58 = vunpack.c.l.s4 %v1742_v57  ;;  %v851_v57 = vld [vmem:[%s2443_s6 + $0x50] sm:$0xff] }
  0xf0   : > { %1349 = vmatmul.mubr.msk.f32.vlgmr.msra.gmra.mrb[4].mxu0 %vm410_vm1, %v302_v60  ;;  %v695_v2 = vunpack.c.0.s8 %v694_v58  ;;  %v852_v58 = vld [vmem:[%s2443_s6 + $0x58] sm:$0xff] }
  0xf1   : > { %487 = vmatprep.mubr.f32.mxu0 %v1741_v7  ;;  %v400_v7 = vlaneseq }
  0xf3   : > { %v1937_v8 = vshrl.u32 %v400_v7, 7  ;;  %vm2052_vm2 = vcmp.lt.s32.totalorder %v400_v7, 64  ;;  %vm718_vm3 = vcmp.ge.s32.totalorder %v400_v7, 64  ;;  %vm719_vm4 = vcmp.lt.s32.totalorder %v400_v7, 128 }
  0xf4   : > { %1350 = vmatmul.mubr.msk.f32.gmra.mrb[6].mxu0 %vm410_vm1, %v303_v61  ;;  %vm2207_vm5 = vmand %vm718_vm3, %vm719_vm4 }
  0xf5   : > { %1543 = vmatprep.mubr.msk.f32.mxu0 %vm410_vm1, %v302_v60  ;;  %v402_v9 = vsub.s32 0, %v1937_v8  ;;  %v406_v11 = vsub.s32 1, %v1937_v8  ;;  %v862_v60 = vld [vmem:[%s2443_s6 + $0xa8] sm:$0xff] }
  0xf6   : > { %v1602_v62 = vpack.c.bf16 %v862_v60, %v861_v59 }
  0xf7   : > { %v403_v12 = vrot.slane %v398_v10, %v402_v9  ;;  %v407_v13 = vrot.slane %v398_v10, %v406_v11  ;;  %v1351_v10 = vld [vmem:[%s2442_s5] ss:$0 sm:$0xff] }
 0x1c3   : > { %v483_v14 = vpop.f32.mrb[4].mxu0 }
 0x1c4   : > { %v484_v15 = vadd.f32 %v483_v14, %v403_v12  ;;  %v485_v16 = vpop.f32.mrb[5].mxu0  ;;  %v864_v14 = vld [vmem:[%s2443_s6 + $0xb8] sm:$0xff] }
 0x1c5   : > { %v486_v17 = vadd.f32 %v485_v16, %v407_v13 }
 0x1c6   : > { %v494_v20 = vmax.f32 %v484_v15, 0.0  ;;  %v895_v15 = vld [vmem:[%s2443_s6 + $0x1b0] sm:$0xff] }
 0x1c7   : > { %v489_v18 = vpop.f32.mrb[6].mxu0  ;;  %v495_v19 = vmax.f32 %v486_v17, 0.0  ;;  %v896_v17 = vld [vmem:[%s2443_s6 + $0x1b8] sm:$0xff] }
 0x1c8   : > { %v490_v21 = vadd.f32 %v489_v18, %v403_v12  ;;  %v491_v22 = vpop.f32.mrb[7].mxu0  ;;  %v1636_v12 = vpack.c.bf16 %v878_v6, %v877_v5  ;;  %v847_v18 = vld [vmem:[%s2443_s6 + $0x30] sm:$0xff]  ;;  %v1616_v6 = vpack.c.bf16 %v852_v58, %v851_v57 }
 0x1c9   : > { %v492_v23 = vadd.f32 %v491_v22, %v407_v13  ;;  %594 = vmatprep.mubr.f32.mxu1 %v495_v19  ;;  %v863_v13 = vld [vmem:[%s2443_s6 + $0xb0] sm:$0xff]  ;;  %v848_v19 = vld [vmem:[%s2443_s6 + $0x38] sm:$0xff] }
 0x1ca   : > { %595 = vmatmul.mubr.f32.vlgmr.msra.gmra.mrb[0].mxu1 %v494_v20  ;;  %v496_v25 = vmax.f32 %v490_v21, 0.0  ;;  %v1606_v16 = vpack.c.bf16 %v864_v14, %v863_v13  ;;  %v2043_v20 = vsub.s32 %v695_v2, %v1937_v8  ;;  %v1638_v21 = vpack.c.bf16 %v896_v17, %v895_v15  ;;  %v869_v13 = vld [vmem:[%s2443_s6 + $0xe0] sm:$0xff]  ;;  %v870_v14 = vld [vmem:[%s2443_s6 + $0xe8] sm:$0xff] }
 0x1cb   : > { %v497_v24 = vmax.f32 %v492_v23, 0.0  ;;  %1629 = vmatpush3.bf16.msra.mxu1 %v1628_v45  ;;  %v1608_v22 = vpack.c.bf16 %v848_v19, %v847_v18  ;;  %v879_v23 = vld [vmem:[%s2443_s6 + $0x130] sm:$0xff]  ;;  %v901_v15 = vld [vmem:[%s2443_s6 + $0x1e0] sm:$0xff]  ;;  %v1618_v18 = vpack.c.bf16 %v870_v14, %v869_v13  ;;  %v902_v19 = vld [vmem:[%s2443_s6 + $0x1e8] sm:$0xff] }
 0x1cc   : > { %1631 = vmatprep.subr.bf16.mxu1 %v1630_v50  ;;  %v867_v50 = vld [vmem:[%s2443_s6 + $0xd0] sm:$0xff]  ;;  %v956_v13 = vld [vmem:[%s2443_s6 + $0x398] sm:$0xff] }
 0x1cd   : > { %599 = vmatprep.mubr.f32.mxu1 %v497_v24  ;;  %v880_v24 = vld [vmem:[%s2443_s6 + $0x138] sm:$0xff]  ;;  %v1614_v55 = vpack.c.bf16 %v868_v51, %v867_v50  ;;  %v962_v51 = vld [vmem:[%s2443_s6 + $0x3c8] sm:$0xff] }
 0x1ce   : > { %600 = vmatmul.mubr.f32.gmra.mrb[2].mxu1 %v496_v25 }
 0x1cf   : > { %1633 = vmatpush3.bf16.msra.mxu1 %v1632_v56  ;;  %v900_v56 = vld [vmem:[%s2443_s6 + $0x1d8] sm:$0xff] }
 0x1d0   : > { %v1646_v5 = vpack.c.bf16 %v900_v56, %v899_v52 }
 0x29d   : > { %v1389_v26 = vpop.f32.mrb[0].mxu1 }
 0x29e   : > { %v1390_v27 = vpop.f32.mrb[1].mxu1 }
 0x29f   : > { %v1391_v28 = vadd.f32 %v1390_v27, %v1389_v26  ;;  %v1640_v27 = vpack.c.bf16 %v880_v24, %v879_v23  ;;  %v1650_v23 = vpack.c.bf16 %v902_v19, %v901_v15  ;;  %v855_v26 = vld [vmem:[%s2443_s6 + $0x70] sm:$0xff]  ;;  %v908_v19 = vld [vmem:[%s2443_s6 + $0x218] sm:$0xff] }
 0x2a1   : > { %v1392_v29 = vpop.f32.mrb[2].mxu1 }
 0x2a2   : > { %v1393_v30 = vpop.f32.mrb[3].mxu1 }
 0x2a3   : > { %v1394_v31 = vadd.f32 %v1393_v30, %v1392_v29  ;;  %v865_v30 = vld [vmem:[%s2443_s6 + $0xc0] sm:$0xff] }
 0x2a5   : > { %v1590_v32 = vpack.c.bf16 %v1394_v31, %v1391_v28  ;;  %v866_v31 = vld [vmem:[%s2443_s6 + $0xc8] sm:$0xff] }
 0x2a6   : > { %v1610_v34 = vpack.c.bf16 %v866_v31, %v865_v30 }
 0x2a7   : > { %1591 = vmatprep.subr.bf16.mxu0 %v1590_v32 }
 0x2a8   : > { %1593 = vmatpush3.bf16.msra.mxu0 %v1590_v32  ;;  %v897_v32 = vld [vmem:[%s2443_s6 + $0x1c0] sm:$0xff] }
 0x2a9   : > { %1595 = vmatprep.subr.bf16.mxu0 %v1594_v36  ;;  %v849_v36 = vld [vmem:[%s2443_s6 + $0x40] sm:$0xff]  ;;  %v1642_v40 = vpack.c.bf16 %v898_v35, %v897_v32  ;;  %v872_v32 = vld [vmem:[%s2443_s6 + $0xf8] sm:$0xff] }
 0x2ab   : > { %1544 = vmatmul.mubr.msk.f32.vlgmr.msra.gmra.mrb[8].mxu0 %vm410_vm1, %v303_v61  ;;  %v893_v61 = vld [vmem:[%s2443_s6 + $0x1a0] sm:$0xff] }
 0x2ac   : > { %1597 = vmatpush3.bf16.msra.mxu0 %v1596_v41  ;;  %v1634_v3 = vpack.c.bf16 %v894_v63, %v893_v61  ;;  %v1612_v41 = vpack.c.bf16 %v850_v37, %v849_v36  ;;  %v883_v63 = vld [vmem:[%s2443_s6 + $0x150] sm:$0xff]  ;;  %v856_v37 = vld [vmem:[%s2443_s6 + $0x78] sm:$0xff] }
 0x2ad   : > { %1599 = vmatprep.subr.bf16.mxu0 %v1598_v49 }
 0x2ae   : > { %1635 = vmatprep.subr.bf16.mxu1 %v1634_v3 }
 0x2af   : > { %1637 = vmatpush3.bf16.msra.mxu1 %v1636_v12  ;;  %v1648_v12 = vpack.c.bf16 %v884_v0, %v883_v63  ;;  %v937_v63 = vld [vmem:[%s2443_s6 + $0x300] sm:$0xff]  ;;  %v938_v0 = vld [vmem:[%s2443_s6 + $0x308] sm:$0xff] }
 0x2b0   : > { %1601 = vmatpush3.bf16.msra.mxu0 %v1600_v54  ;;  %1639 = vmatprep.subr.bf16.mxu1 %v1638_v21  ;;  %v853_v21 = vld [vmem:[%s2443_s6 + $0x60] sm:$0xff] }
 0x2b1   : > { %1603 = vmatprep.subr.bf16.mxu0 %v1602_v62 }
 0x2b3   : > { %1641 = vmatpush3.bf16.msra.mxu1 %v1640_v27  ;;  %v886_v27 = vld [vmem:[%s2443_s6 + $0x168] sm:$0xff] }
 0x2b4   : > { %1605 = vmatpush3.bf16.msra.mxu0 %v1604_v4  ;;  %1643 = vmatprep.subr.bf16.mxu1 %v1642_v40  ;;  %v888_v40 = vld [vmem:[%s2443_s6 + $0x178] sm:$0xff] }
 0x2b5   : > { %1607 = vmatprep.subr.bf16.mxu0 %v1606_v16 }
 0x2b7   : > { %1645 = vmatpush3.bf16.msra.mxu1 %v1644_v46  ;;  %v922_v46 = vld [vmem:[%s2443_s6 + $0x288] sm:$0xff] }
 0x2b8   : > { %1609 = vmatpush3.bf16.msra.mxu0 %v1608_v22  ;;  %1647 = vmatprep.subr.bf16.mxu1 %v1646_v5  ;;  %v854_v22 = vld [vmem:[%s2443_s6 + $0x68] sm:$0xff]  ;;  %v1692_v5 = vpack.c.bf16 %v938_v0, %v937_v63 }
 0x2b9   : > { %1611 = vmatprep.subr.bf16.mxu0 %v1610_v34  ;;  %v1620_v24 = vpack.c.bf16 %v854_v22, %v853_v21  ;;  %v904_v34 = vld [vmem:[%s2443_s6 + $0x1f8] sm:$0xff] }
 0x2ba   : > { %v940_v21 = vld [vmem:[%s2443_s6 + $0x318] sm:$0xff] }
 0x2bb   : > { %1649 = vmatpush3.bf16.msra.mxu1 %v1648_v12  ;;  %v955_v12 = vld [vmem:[%s2443_s6 + $0x390] sm:$0xff] }
 0x2bc   : > { %1613 = vmatpush3.bf16.msra.mxu0 %v1612_v41  ;;  %1651 = vmatprep.subr.bf16.mxu1 %v1650_v23  ;;  %v1624_v41 = vpack.c.bf16 %v856_v37, %v855_v26  ;;  %v1694_v23 = vpack.c.bf16 %v956_v13, %v955_v12  ;;  %v942_v26 = vld [vmem:[%s2443_s6 + $0x328] sm:$0xff]  ;;  %v927_v37 = vld [vmem:[%s2443_s6 + $0x2b0] sm:$0xff]  ;;  %v933_v12 = vld [vmem:[%s2443_s6 + $0x2e0] sm:$0xff] }
 0x2bd   : > { %1615 = vmatprep.subr.bf16.mxu0 %v1614_v55  ;;  %v934_v13 = vld [vmem:[%s2443_s6 + $0x2e8] sm:$0xff] }
 0x2c0   : > { %1617 = vmatpush3.bf16.msra.mxu0 %v1616_v6  ;;  %v993_v6 = vsub.s32 5, %v1937_v8 }
 0x2c1   : > { %1619 = vmatprep.subr.bf16.mxu0 %v1618_v18  ;;  %v907_v18 = vld [vmem:[%s2443_s6 + $0x210] sm:$0xff] }
 0x2c4   : > { %1621 = vmatpush3.bf16.msra.mxu0 %v1620_v24  ;;  %v926_v24 = vld [vmem:[%s2443_s6 + $0x2a8] sm:$0xff] }
 0x37e   : > { %v1545_v25 = vpop.f32.mrb[8].mxu0 }
 0x37f   : > { %v684_v28 = vadd.f32 %v1545_v25, %v1351_v10  ;;  %v678_v29 = vpop.f32.mrb[9].mxu0  ;;  %v885_v25 = vld [vmem:[%s2443_s6 + $0x160] sm:$0xff] }
 0x380   : > { %v679_v33 = vadd.f32 %v1351_v10, %v678_v29  ;;  %v1652_v31 = vpack.c.bf16 %v886_v27, %v885_v25  ;;  %v957_v25 = vld [vmem:[%s2443_s6 + $0x3a0] sm:$0xff]  ;;  %v958_v27 = vld [vmem:[%s2443_s6 + $0x3a8] sm:$0xff] }
 0x381   : > { %v775_v38 = vrot.slane %v684_v28, %v2043_v20  ;;  %v803_v39 = vcombine.high %v684_v28, %v684_v28  ;;  %767 = vst.msk [vmem:[#allocation2 + $0x4] sm:$0x1] %vm2052_vm2, %v684_v28  ;;  %v871_v28 = vld [vmem:[%s2443_s6 + $0xf0] sm:$0xff] }
 0x382   : > { %v699_v44 = vrot.slane %v679_v33, %v2043_v20  ;;  %v730_v45 = vcombine.high %v679_v33, %v679_v33  ;;  %691 = vst.msk [vmem:[#allocation2] sm:$0x1] %vm2052_vm2, %v679_v33  ;;  %v903_v33 = vld [vmem:[%s2443_s6 + $0x1f0] sm:$0xff]  ;;  %v1622_v35 = vpack.c.bf16 %v872_v32, %v871_v28  ;;  %1653 = vmatpush3.bf16.msra.mxu1 %v1652_v31  ;;  %v909_v32 = vld [vmem:[%s2443_s6 + $0x220] sm:$0xff] }
 0x383   : > { %v2087_v47 = vrot.slane %v803_v39, %v2043_v20  ;;  %v776_v48 = vcombine.high %v775_v38, %v775_v38  ;;  %v783_v49 = vrot.slane %v775_v38, %v2043_v20  ;;  %v1654_v36 = vpack.c.bf16 %v904_v34, %v903_v33  ;;  %v887_v38 = vld [vmem:[%s2443_s6 + $0x170] sm:$0xff]  ;;  %v910_v33 = vld [vmem:[%s2443_s6 + $0x228] sm:$0xff] }
 0x384   : > { %v737_v53 = vrot.slane %v730_v45, %v2043_v20  ;;  %v707_v54 = vrot.slane %v699_v44, %v2043_v20  ;;  %v700_v60 = vcombine.high %v699_v44, %v699_v44  ;;  %v1656_v42 = vpack.c.bf16 %v888_v40, %v887_v38  ;;  %1623 = vmatprep.subr.bf16.mxu0 %v1622_v35  ;;  %v921_v45 = vld [vmem:[%s2443_s6 + $0x280] sm:$0xff]  ;;  %v928_v38 = vld [vmem:[%s2443_s6 + $0x2b8] sm:$0xff] }
 0x385   : > { %v790_v59 = vrot.slane %v776_v48, %v2043_v20  ;;  %v795_v61 = vcombine.high %v783_v49, %v783_v49  ;;  %v817_v62 = vrot.slane %v2087_v47, %v2043_v20  ;;  %v820_v30 = vcombine.high %v2087_v47, %v2087_v47  ;;  %1655 = vmatprep.subr.bf16.mxu1 %v1654_v36  ;;  %v953_v47 = vld [vmem:[%s2443_s6 + $0x380] sm:$0xff]  ;;  %v960_v40 = vld [vmem:[%s2443_s6 + $0x3b8] sm:$0xff] }
 0x386   : > { %v744_v1 = vrot.slane %v737_v53, %v2043_v20  ;;  %v722_v2 = vcombine.high %v707_v54, %v707_v54  ;;  %v747_v4 = vcombine.high %v737_v53, %v737_v53  ;;  %v714_v16 = vrot.slane %v700_v60, %v2043_v20  ;;  %1625 = vmatpush3.bf16.msra.mxu0 %v1624_v41  ;;  %v941_v36 = vld [vmem:[%s2443_s6 + $0x320] sm:$0xff] }
 0x387   : > { %791 = vrot.lane.b32.xlu0 %v790_v59, %s1743_s15  ;;  %v798_v3 = vcombine.high %v790_v59, %v790_v59  ;;  %797 = vst.msk [vmem:[#allocation2 + $0x5] sm:$0x1] %vm2052_vm2, %v795_v61  ;;  %819 = vst.msk [vmem:[#allocation2 + $0x6] sm:$0x1] %vm2052_vm2, %v817_v62  ;;  %v832_v17 = vcombine.high %v817_v62, %v817_v62  ;;  %v827_v44 = vrot.slane %v820_v30, %v2043_v20  ;;  %v905_v59 = vld [vmem:[%s2443_s6 + $0x200] sm:$0xff]  ;;  %v906_v62 = vld [vmem:[%s2443_s6 + $0x208] sm:$0xff] }
 0x388   : > { %746 = vst.msk [vmem:[#allocation2 + $0x2] sm:$0x1] %vm2052_vm2, %v744_v1  ;;  %724 = vst.msk [vmem:[#allocation2 + $0x1] sm:$0x1] %vm2052_vm2, %v722_v2  ;;  %v759_v10 = vcombine.high %v744_v1, %v744_v1  ;;  %v754_v29 = vrot.slane %v747_v4, %v2043_v20  ;;  %v725_v39 = vcombine.high %v714_v16, %v714_v16  ;;  %1657 = vmatpush3.bf16.msra.mxu1 %v1656_v42  ;;  %v954_v20 = vld [vmem:[%s2443_s6 + $0x388] sm:$0xff]  ;;  %v923_v1 = vld [vmem:[%s2443_s6 + $0x290] sm:$0xff] }
 0x389   : > { %799 = vrot.lane.b32.xlu1 %v798_v3, %s1743_s15  ;;  %834 = vst.msk [vmem:[#allocation2 + $0x7] sm:$0x1] %vm2052_vm2, %v832_v17  ;;  %v1658_v48 = vpack.c.bf16 %v922_v46, %v921_v45  ;;  %v835_v49 = vcombine.high %v827_v44, %v827_v44  ;;  %v1690_v50 = vpack.c.bf16 %v954_v20, %v953_v47  ;;  %v985_v60 = vsub.s32 3, %v1937_v8  ;;  %v924_v2 = vld [vmem:[%s2443_s6 + $0x298] sm:$0xff]  ;;  %v943_v47 = vld [vmem:[%s2443_s6 + $0x330] sm:$0xff]  ;;  %v929_v20 = vld [vmem:[%s2443_s6 + $0x2c0] sm:$0xff] }
 0x38a   : > { %761 = vst.msk [vmem:[#allocation2 + $0x3] sm:$0x1] %vm2052_vm2, %v759_v10  ;;  %v762_v43 = vcombine.high %v754_v29, %v754_v29  ;;  %v981_v61 = vsub.s32 2, %v1937_v8  ;;  %v1660_v4 = vpack.c.bf16 %v906_v62, %v905_v59  ;;  %v1001_v10 = vsub.s32 7, %v1937_v8  ;;  %v931_v59 = vld [vmem:[%s2443_s6 + $0x2d0] sm:$0xff]  ;;  %v964_v62 = vld [vmem:[%s2443_s6 + $0x3d8] sm:$0xff] }
 0x38b   : > { %715 = vrot.lane.b32.xlu0 %v714_v16, %s1743_s15  ;;  %1659 = vmatprep.subr.bf16.mxu0 %v1658_v48  ;;  %v1662_v22 = vpack.c.bf16 %v924_v2, %v923_v1  ;;  %v1664_v30 = vpack.c.bf16 %v908_v19, %v907_v18  ;;  %v1698_v35 = vpack.c.bf16 %v958_v27, %v957_v25  ;;  %v944_v48 = vld [vmem:[%s2443_s6 + $0x338] sm:$0xff]  ;;  %v915_v1 = vld [vmem:[%s2443_s6 + $0x250] sm:$0xff]  ;;  %v917_v18 = vld [vmem:[%s2443_s6 + $0x260] sm:$0xff] }
 0x38c   : > { %1691 = vmatprep.subr.bf16.mxu1 %v1690_v50  ;;  %v1668_v41 = vpack.c.bf16 %v910_v33, %v909_v32  ;;  %v1700_v42 = vpack.c.bf16 %v942_v26, %v941_v36  ;;  %v1670_v45 = vpack.c.bf16 %v928_v38, %v927_v37  ;;  %v961_v50 = vld [vmem:[%s2443_s6 + $0x3c0] sm:$0xff]  ;;  %v916_v2 = vld [vmem:[%s2443_s6 + $0x258] sm:$0xff]  ;;  %v918_v19 = vld [vmem:[%s2443_s6 + $0x268] sm:$0xff]  ;;  %v989_v37 = vsub.s32 4, %v1937_v8 }
 0x38d   : > { %755 = vrot.lane.b32.xlu1 %v754_v29, %s1743_s15  ;;  %v967_v25 = vld [vmem:[%s2443_s6 + $0x3f0] sm:$0xff]  ;;  %v968_v27 = vld [vmem:[%s2443_s6 + $0x3f8] sm:$0xff]  ;;  %v997_v38 = vsub.s32 6, %v1937_v8 }
 0x38e   : > { %v1718_v32 = vpack.c.bf16 %v968_v27, %v967_v25  ;;  %v920_v33 = vld [vmem:[%s2443_s6 + $0x278] sm:$0xff] }
 0x38f   : > { %726 = vrot.lane.b32.xlu0 %v725_v39, %s1743_s15  ;;  %v959_v39 = vld [vmem:[%s2443_s6 + $0x3b0] sm:$0xff] }
 0x390   : > { %v1702_v46 = vpack.c.bf16 %v960_v40, %v959_v39 }
 0x391   : > { %763 = vrot.lane.b32.xlu1 %v762_v43, %s1743_s15  ;;  %v911_v43 = vld [vmem:[%s2443_s6 + $0x230] sm:$0xff] }
 0x393   : > { %828 = vrot.lane.b32.xlu0 %v827_v44, %s1743_s15  ;;  %v912_v44 = vld [vmem:[%s2443_s6 + $0x238] sm:$0xff] }
 0x395   : > { %836 = vrot.lane.b32.xlu1 %v835_v49, %s1743_s15  ;;  %v930_v49 = vld [vmem:[%s2443_s6 + $0x2c8] sm:$0xff] }
 0x3f9   : > { %v792_v52 = vpop.permute.xlu0 %791 }
 0x3fa   : > { %794 = vst.msk [vmem:[#allocation2 + $0x4] sm:$0x1] %vm2207_vm5, %v792_v52  ;;  %v1672_v52 = vpack.c.bf16 %v912_v44, %v911_v43  ;;  %v969_v43 = vld [vmem:[%s2444_s7] sm:$0x1] }
 0x3fb   : > { %v800_v53 = vpop.permute.xlu1 %799 }
 0x3fc   : > { %802 = vst.msk [vmem:[#allocation2 + $0x5] sm:$0x1] %vm2207_vm5, %v800_v53  ;;  %v1704_v53 = vpack.c.bf16 %v944_v48, %v943_v47 }
 0x3fd   : > { %v716_v54 = vpop.permute.xlu0 %715 }
 0x3fe   : > { %721 = vst.msk [vmem:[#allocation2] sm:$0x1] %vm2207_vm5, %v716_v54  ;;  %v913_v54 = vld [vmem:[%s2443_s6 + $0x240] sm:$0xff] }
 0x3ff   : > { %v756_v55 = vpop.permute.xlu1 %755 }
 0x400   : > { %758 = vst.msk [vmem:[#allocation2 + $0x2] sm:$0x1] %vm2207_vm5, %v756_v55  ;;  %v914_v55 = vld [vmem:[%s2443_s6 + $0x248] sm:$0xff] }
 0x401   : > { %v727_v7 = vpop.permute.xlu0 %726  ;;  %v1676_v63 = vpack.c.bf16 %v914_v55, %v913_v54 }
 0x402   : > { %729 = vst.msk [vmem:[#allocation2 + $0x1] sm:$0x1] %vm2207_vm5, %v727_v7  ;;  %v1674_v7 = vpack.c.bf16 %v930_v49, %v929_v20 }
 0x403   : > { %v764_v56 = vpop.permute.xlu1 %763 }
 0x404   : > { %766 = vst.msk [vmem:[#allocation2 + $0x3] sm:$0x1] %vm2207_vm5, %v764_v56  ;;  %v1706_v56 = vpack.c.bf16 %v962_v51, %v961_v50 }
 0x405   : > { %v829_v57 = vpop.permute.xlu0 %828 }
 0x406   : > { %831 = vst.msk [vmem:[#allocation2 + $0x6] sm:$0x1] %vm2207_vm5, %v829_v57  ;;  %v945_v57 = vld [vmem:[%s2443_s6 + $0x340] sm:$0xff] }
 0x407   : > { %v837_v58 = vpop.permute.xlu1 %836 }
 0x408   : > { %839 = vst.msk [vmem:[#allocation2 + $0x7] sm:$0x1] %vm2207_vm5, %v837_v58  ;;  %v946_v58 = vld [vmem:[%s2443_s6 + $0x348] sm:$0xff] }
 0x409   : > { %v1708_v0 = vpack.c.bf16 %v946_v58, %v945_v57 }
 0x40f   : > { %v2247_v3 = vld [vmem:[#allocation2] sm:$0xff] }
 0x410   : > { %v978_v14 = vrot.slane %v2247_v3, %v406_v11  ;;  %v986_v15 = vrot.slane %v2247_v3, %v985_v60  ;;  %v974_v16 = vrot.slane %v2247_v3, %v402_v9  ;;  %v982_v17 = vrot.slane %v2247_v3, %v981_v61  ;;  %v939_v11 = vld [vmem:[%s2443_s6 + $0x310] sm:$0xff]  ;;  %v925_v9 = vld [vmem:[%s2443_s6 + $0x2a0] sm:$0xff]  ;;  %v932_v60 = vld [vmem:[%s2443_s6 + $0x2d8] sm:$0xff] }
 0x411   : > { %v994_v28 = vrot.slane %v2247_v3, %v993_v6  ;;  %v1002_v29 = vrot.slane %v2247_v3, %v1001_v10  ;;  %v1696_v31 = vpack.c.bf16 %v940_v21, %v939_v11  ;;  %v1666_v34 = vpack.c.bf16 %v926_v24, %v925_v9  ;;  %v963_v61 = vld [vmem:[%s2443_s6 + $0x3d0] sm:$0xff]  ;;  %v948_v10 = vld [vmem:[%s2443_s6 + $0x358] sm:$0xff]  ;;  %v949_v9 = vld [vmem:[%s2443_s6 + $0x360] sm:$0xff] }
 0x412   : > { %1075 = vmatprep.mubr.f32.mxu0 %v978_v14  ;;  %1145 = vmatprep.mubr.f32.mxu1 %v986_v15  ;;  %v947_v6 = vld [vmem:[%s2443_s6 + $0x350] sm:$0xff]  ;;  %v965_v14 = vld [vmem:[%s2443_s6 + $0x3e0] sm:$0xff]  ;;  %v966_v15 = vld [vmem:[%s2443_s6 + $0x3e8] sm:$0xff]  ;;  %v1682_v11 = vpack.c.bf16 %v934_v13, %v933_v12  ;;  %v990_v39 = vrot.slane %v2247_v3, %v989_v37  ;;  %v998_v40 = vrot.slane %v2247_v3, %v997_v38 }
 0x413   : > { %1076 = vmatmul.mubr.f32.vlgmr.msra.gmra.mrb[10].mxu0 %v974_v16  ;;  %1146 = vmatmul.mubr.f32.vlgmr.msra.gmra.mrb[4].mxu1 %v982_v17  ;;  %v1680_v16 = vpack.c.bf16 %v916_v2, %v915_v1  ;;  %v1712_v17 = vpack.c.bf16 %v948_v10, %v947_v6  ;;  %v1714_v21 = vpack.c.bf16 %v966_v15, %v965_v14  ;;  %v936_v24 = vld [vmem:[%s2443_s6 + $0x2f8] sm:$0xff] }
 0x414   : > { %1661 = vmatpush3.bf16.msra.mxu0 %v1660_v4  ;;  %1693 = vmatpush3.bf16.msra.mxu1 %v1692_v5  ;;  %v1678_v4 = vpack.c.bf16 %v932_v60, %v931_v59  ;;  %v1710_v5 = vpack.c.bf16 %v964_v62, %v963_v61 }
 0x415   : > { %1215 = vmatprep.mubr.f32.mxu0 %v994_v28  ;;  %1285 = vmatprep.mubr.f32.mxu1 %v1002_v29  ;;  %v1684_v28 = vpack.c.bf16 %v918_v19, %v917_v18 }
 0x416   : > { %1663 = vmatprep.subr.bf16.mxu0 %v1662_v22  ;;  %1695 = vmatprep.subr.bf16.mxu1 %v1694_v23  ;;  %v950_v22 = vld [vmem:[%s2443_s6 + $0x368] sm:$0xff]  ;;  %v935_v23 = vld [vmem:[%s2443_s6 + $0x2f0] sm:$0xff] }
 0x417   : > { %v1716_v29 = vpack.c.bf16 %v950_v22, %v949_v9 }
 0x418   : > { %1665 = vmatpush3.bf16.msra.mxu0 %v1664_v30  ;;  %1697 = vmatpush3.bf16.msra.mxu1 %v1696_v31  ;;  %v919_v30 = vld [vmem:[%s2443_s6 + $0x270] sm:$0xff]  ;;  %v1686_v31 = vpack.c.bf16 %v936_v24, %v935_v23 }
 0x419   : > { %1667 = vmatprep.subr.bf16.mxu0 %v1666_v34  ;;  %1699 = vmatprep.subr.bf16.mxu1 %v1698_v35  ;;  %v951_v34 = vld [vmem:[%s2443_s6 + $0x370] sm:$0xff]  ;;  %v952_v35 = vld [vmem:[%s2443_s6 + $0x378] sm:$0xff]  ;;  %v1688_v36 = vpack.c.bf16 %v920_v33, %v919_v30 }
 0x41a   : > { %v1720_v26 = vpack.c.bf16 %v952_v35, %v951_v34 }
 0x41c   : > { %1669 = vmatpush3.bf16.msra.mxu0 %v1668_v41  ;;  %1701 = vmatpush3.bf16.msra.mxu1 %v1700_v42 }
 0x41d   : > { %1671 = vmatprep.subr.bf16.mxu0 %v1670_v45  ;;  %1703 = vmatprep.subr.bf16.mxu1 %v1702_v46 }
 0x420   : > { %1673 = vmatpush3.bf16.msra.mxu0 %v1672_v52  ;;  %1705 = vmatpush3.bf16.msra.mxu1 %v1704_v53 }
 0x421   : > { %1675 = vmatprep.subr.bf16.mxu0 %v1674_v7  ;;  %1707 = vmatprep.subr.bf16.mxu1 %v1706_v56 }
 0x424   : > { %1677 = vmatpush3.bf16.msra.mxu0 %v1676_v63  ;;  %1709 = vmatpush3.bf16.msra.mxu1 %v1708_v0 }
 0x425   : > { %1679 = vmatprep.subr.bf16.mxu0 %v1678_v4  ;;  %1711 = vmatprep.subr.bf16.mxu1 %v1710_v5 }
 0x428   : > { %1681 = vmatpush3.bf16.msra.mxu0 %v1680_v16  ;;  %1713 = vmatpush3.bf16.msra.mxu1 %v1712_v17 }
 0x429   : > { %1683 = vmatprep.subr.bf16.mxu0 %v1682_v11  ;;  %1715 = vmatprep.subr.bf16.mxu1 %v1714_v21 }
 0x42c   : > { %1685 = vmatpush3.bf16.msra.mxu0 %v1684_v28  ;;  %1717 = vmatpush3.bf16.msra.mxu1 %v1716_v29 }
 0x42d   : > { %1687 = vmatprep.subr.bf16.mxu0 %v1686_v31  ;;  %1719 = vmatprep.subr.bf16.mxu1 %v1718_v32 }
 0x430   : > { %1689 = vmatpush3.bf16.msra.mxu0 %v1688_v36  ;;  %1721 = vmatpush3.bf16.msra.mxu1 %v1720_v26 }
 0x433   : > { %1216 = vmatmul.mubr.f32.vlgmr.msra.gmra.mrb[12].mxu0 %v990_v39  ;;  %1286 = vmatmul.mubr.f32.vlgmr.msra.gmra.mrb[6].mxu1 %v998_v40 }
 0x4e6   : > { %v1431_v41 = vpop.f32.mrb[10].mxu0  ;;  %v1466_v42 = vpop.f32.mrb[4].mxu1 }
 0x4e7   : > { %v1432_v44 = vpop.f32.mrb[11].mxu0  ;;  %v1467_v45 = vpop.f32.mrb[5].mxu1 }
 0x4e8   : > { %v1433_v46 = vadd.f32 %v1432_v44, %v1431_v41  ;;  %v1468_v47 = vadd.f32 %v1467_v45, %v1466_v42 }
 0x4ea   : > { %v1078_v8 = vadd.f32 %v1433_v46, %v969_v43 }
 0x4ec   : > { %v1148_v48 = vadd.f32 %v1468_v47, %v1078_v8 }
 0x506   : > { %v1501_v20 = vpop.f32.mrb[12].mxu0  ;;  %v1536_v49 = vpop.f32.mrb[6].mxu1 }
 0x507   : > { %v1502_v50 = vpop.f32.mrb[13].mxu0  ;;  %v1537_v51 = vpop.f32.mrb[7].mxu1 }
 0x508   : > { %v1503_v3 = vadd.f32 %v1502_v50, %v1501_v20  ;;  %v1538_v52 = vadd.f32 %v1537_v51, %v1536_v49 }
 0x50a   : > { %v1218_v53 = vadd.f32 %v1503_v3, %v1148_v48 }
 0x50c   : > { %v1288_v54 = vadd.f32 %v1538_v52, %v1218_v53 }
 0x50e   : > { %1292 = vst.msk [vmem:[%s301_s21] sm:$0x1] %vm1291_vm6, %v1288_v54 }
 0x50f PF: > { %s18_s27 = sadd.s32 1, %s1739_s27  }
 0x510   : > { %p15_p4 = scmp.ge.s32.totalorder %s18_s27, 4  }
 0x512   :  { %17 = sbr.rel (!%p15_p4) target bundleno = 1 (0x1), region = 82 }

</bundles_post_ra>
